<compile_context>
chip_gen: v6e
topology: v6e:2x2x1
jax: 0.10.0
libtpu: 0.0.40
codegen_flags: <defaults>
</compile_context>

<pallas_src>
import jax
import jax.numpy as jnp
from jax.experimental import pallas as pl
from jax.experimental.pallas import tpu as pltpu


def _normalize_kernel(x_ref, o_ref, mean_ref, std_ref):
    """Per-feature standardization of one (B, TF) feature tile.

    x_ref   : (B, TF) VMEM input tile
    o_ref   : (B, TF) VMEM output tile, (x - mean) / std (input dtype)
    mean_ref: (1, TF) VMEM output (per-feature mean, f32)
    std_ref : (1, TF) VMEM output (per-feature std, f32, zero-variance -> 1)
    """
    x = x_ref[...]
    if x.dtype != jnp.float32:          # only cast when actually needed
        x = x.astype(jnp.float32)

    n = x_ref.shape[0]
    inv_n = jnp.float32(1.0 / n)        # trace-time constant: multiply, not divide

    # Fused one-pass reductions over the batch (sublane) axis.
    s = jnp.sum(x, axis=0, keepdims=True)            # (1, TF)
    ss = jnp.sum(x * x, axis=0, keepdims=True)       # (1, TF)

    mean = s * inv_n
    var = jnp.maximum(ss * inv_n - mean * mean, 0.0)  # clamp fp32 cancellation
    std = jnp.sqrt(var)

    # Epsilon guard against zero / tiny variance features.
    eps = jnp.float32(1e-12)
    safe_std = jnp.where(var <= eps, jnp.ones_like(std), std)

    # Cheap (1, TF) reciprocal, then a broadcast multiply over the full tile
    # instead of a full-size (B, TF) divide.
    inv_std = pl.reciprocal(safe_std)                 # exact; tiny row only

    o_ref[...] = ((x - mean) * inv_std).astype(o_ref.dtype)
    mean_ref[...] = mean
    std_ref[...] = safe_std


def _pick_feature_tile(b, f, itemsize):
    """Choose a lane-aligned feature tile that keeps double-buffered tiles small."""
    if f % 128 != 0:
        # Small / ragged feature count: single block along features.
        return f
    # ~2 double-buffered input tiles + 2 output tiles per lane column
    # (use f32 as an upper bound for the output even if input is narrower).
    budget_bytes = 16 * 1024 * 1024
    per_lane_bytes = 2 * b * itemsize + 2 * b * max(itemsize, 4)
    tf = budget_bytes // max(per_lane_bytes, 1)
    tf = max(128, (tf // 128) * 128)
    return min(f, tf)


def normalize(x, *, feature_tile=None):
    """Standardize `x` (batch, features) per feature using a Pallas TPU kernel.

    Returns (x_normalized, mean, std); mean/std are f32 row vectors.
    """
    b, f = x.shape
    tf = feature_tile if feature_tile is not None else _pick_feature_tile(
        b, f, jnp.dtype(x.dtype).itemsize)
    grid = (pl.cdiv(f, tf),)

    out_shapes = (
        jax.ShapeDtypeStruct((b, f), x.dtype),      # normalized x (input dtype)
        jax.ShapeDtypeStruct((1, f), jnp.float32),  # mean
        jax.ShapeDtypeStruct((1, f), jnp.float32),  # std
    )
    return pl.pallas_call(
        _normalize_kernel,
        out_shape=out_shapes,
        grid_spec=pltpu.PrefetchScalarGridSpec(
            num_scalar_prefetch=0,
            grid=grid,
            in_specs=[pl.BlockSpec((b, tf), lambda j: (0, j))],
            out_specs=[
                pl.BlockSpec((b, tf), lambda j: (0, j)),
                pl.BlockSpec((1, tf), lambda j: (0, j)),
                pl.BlockSpec((1, tf), lambda j: (0, j)),
            ],
        ),
        compiler_params=pltpu.CompilerParams(
            # Feature tiles are independent -> megacore-shardable on v7x.
            dimension_semantics=("parallel",),
        ),
    )(x)


if __name__ == "__main__":
    key = jax.random.PRNGKey(0)
    # Small shapes: batch=8 rows (sublane-aligned), 256 features (lane-aligned),
    # feature_tile=128 so the demo actually exercises the tiled grid (2 tiles).
    x = jax.random.normal(key, (8, 256), dtype=jnp.float32) * 3.0 + 1.5

    x_norm, mean, std = normalize(x, feature_tile=128)
    jax.block_until_ready((x_norm, mean, std))

    # Reference check in plain JAX (population std, zero-variance -> 1).
    ref_mean = jnp.mean(x, axis=0, keepdims=True)
    ref_std = jnp.std(x, axis=0, keepdims=True)
    ref_std = jnp.where(ref_std == 0.0, 1.0, ref_std)
    ref = (x - ref_mean) / ref_std
    assert jnp.allclose(x_norm, ref, atol=1e-5, rtol=1e-5)
    assert jnp.allclose(mean, ref_mean, atol=1e-5, rtol=1e-5)
    assert jnp.allclose(std, ref_std, atol=1e-5, rtol=1e-5)

    # bf16 I/O path (halves HBM traffic; reductions still f32 inside the kernel).
    x_bf16 = x.astype(jnp.bfloat16)
    xb_norm, xb_mean, xb_std = normalize(x_bf16, feature_tile=128)
    jax.block_until_ready((xb_norm, xb_mean, xb_std))
    assert xb_norm.dtype == jnp.bfloat16
    xb = x_bf16.astype(jnp.float32)
    rb_mean = jnp.mean(xb, axis=0, keepdims=True)
    rb_std = jnp.std(xb, axis=0, keepdims=True)
    rb_std = jnp.where(rb_std == 0.0, 1.0, rb_std)
    rb = (xb - rb_mean) / rb_std
    assert jnp.allclose(xb_norm.astype(jnp.float32), rb, atol=3e-2, rtol=3e-2)
    assert jnp.allclose(xb_mean, rb_mean, atol=1e-4, rtol=1e-4)
    assert jnp.allclose(xb_std, rb_std, atol=1e-4, rtol=1e-4)

    print("KERNEL_OK")
</pallas_src>

<mosaic_0001>
module attributes {stable_mosaic.version = 11 : i64} {
  func.func @_normalize_kernel(%arg0: i32, %arg1: memref<8x128xf32, #tpu.memory_space<vmem>>, %arg2: memref<8x128xf32, #tpu.memory_space<vmem>>, %arg3: memref<1x128xf32, #tpu.memory_space<vmem>>, %arg4: memref<1x128xf32, #tpu.memory_space<vmem>>) attributes {dimension_semantics = [#tpu.dimension_semantics<parallel>], iteration_bounds = array<i64: 2>, scalar_prefetch = 0 : i64, scratch_operands = 0 : i64, tpu.core_type = #tpu.core_type<tc>, window_params = [{transform_indices = @transform_0, window_bounds = array<i64: 8, 128>}, {transform_indices = @transform_1, window_bounds = array<i64: 8, 128>}, {transform_indices = @transform_2, window_bounds = array<i64: 1, 128>}, {transform_indices = @transform_3, window_bounds = array<i64: 1, 128>}]} {
    %c0 = arith.constant 0 : index
    %c0_0 = arith.constant 0 : index
    %0 = vector.load %arg1[%c0, %c0_0] : memref<8x128xf32, #tpu.memory_space<vmem>>, vector<8x128xf32>
    %cst = arith.constant dense<0.000000e+00> : vector<128xf32>
    %1 = vector.multi_reduction <add>, %0, %cst [0] : vector<8x128xf32> to vector<128xf32>
    %2 = vector.shape_cast %1 : vector<128xf32> to vector<1x128xf32>
    %3 = arith.mulf %0, %0 : vector<8x128xf32>
    %cst_1 = arith.constant dense<0.000000e+00> : vector<128xf32>
    %4 = vector.multi_reduction <add>, %3, %cst_1 [0] : vector<8x128xf32> to vector<128xf32>
    %5 = vector.shape_cast %4 : vector<128xf32> to vector<1x128xf32>
    %cst_2 = arith.constant 1.250000e-01 : f32
    %6 = vector.broadcast %cst_2 : f32 to vector<1x128xf32>
    %7 = arith.mulf %2, %6 : vector<1x128xf32>
    %cst_3 = arith.constant 1.250000e-01 : f32
    %8 = vector.broadcast %cst_3 : f32 to vector<1x128xf32>
    %9 = arith.mulf %5, %8 : vector<1x128xf32>
    %10 = arith.mulf %7, %7 : vector<1x128xf32>
    %11 = arith.subf %9, %10 : vector<1x128xf32>
    %cst_4 = arith.constant 0.000000e+00 : f32
    %12 = vector.broadcast %cst_4 : f32 to vector<1x128xf32>
    %13 = arith.maximumf %11, %12 : vector<1x128xf32>
    %14 = math.sqrt %13 : vector<1x128xf32>
    %cst_5 = arith.constant 9.99999996E-13 : f32
    %15 = vector.broadcast %cst_5 : f32 to vector<1x128xf32>
    %16 = arith.cmpf ole, %13, %15 : vector<1x128xf32>
    %cst_6 = arith.constant 1.000000e+00 : f32
    %17 = vector.broadcast %cst_6 : f32 to vector<1x128xf32>
    %18 = arith.select %16, %17, %14 : vector<1x128xi1>, vector<1x128xf32>
    %19 = tpu.reciprocal %18 : vector<1x128xf32> -> vector<1x128xf32>
    %20 = vector.broadcast %7 : vector<1x128xf32> to vector<8x128xf32>
    %21 = arith.subf %0, %20 : vector<8x128xf32>
    %22 = vector.broadcast %19 : vector<1x128xf32> to vector<8x128xf32>
    %23 = arith.mulf %21, %22 : vector<8x128xf32>
    %c0_7 = arith.constant 0 : index
    %c0_8 = arith.constant 0 : index
    %24 = vector.load %arg2[%c0_7, %c0_8] : memref<8x128xf32, #tpu.memory_space<vmem>>, vector<8x128xf32>
    tpu.vector_store %arg2[%c0_7, %c0_8], %23 {strides = array<i32>} : memref<8x128xf32, #tpu.memory_space<vmem>>, vector<8x128xf32>,
    %c0_9 = arith.constant 0 : index
    %c0_10 = arith.constant 0 : index
    %25 = vector.load %arg3[%c0_9, %c0_10] : memref<1x128xf32, #tpu.memory_space<vmem>>, vector<1x128xf32>
    tpu.vector_store %arg3[%c0_9, %c0_10], %7 {strides = array<i32>} : memref<1x128xf32, #tpu.memory_space<vmem>>, vector<1x128xf32>,
    %c0_11 = arith.constant 0 : index
    %c0_12 = arith.constant 0 : index
    %26 = vector.load %arg4[%c0_11, %c0_12] : memref<1x128xf32, #tpu.memory_space<vmem>>, vector<1x128xf32>
    tpu.vector_store %arg4[%c0_11, %c0_12], %18 {strides = array<i32>} : memref<1x128xf32, #tpu.memory_space<vmem>>, vector<1x128xf32>,
    return
  }
  func.func @transform_0(%arg0: i32) -> (i32, i32) {
    %c0_i32 = arith.constant 0 : i32
    %c0_i32_0 = arith.constant 0 : i32
    return %c0_i32, %arg0 : i32, i32
  }
  func.func @transform_1(%arg0: i32) -> (i32, i32) {
    %c0_i32 = arith.constant 0 : i32
    %c0_i32_0 = arith.constant 0 : i32
    return %c0_i32, %arg0 : i32, i32
  }
  func.func @transform_2(%arg0: i32) -> (i32, i32) {
    %c0_i32 = arith.constant 0 : i32
    %c0_i32_0 = arith.constant 0 : i32
    return %c0_i32, %arg0 : i32, i32
  }
  func.func @transform_3(%arg0: i32) -> (i32, i32) {
    %c0_i32 = arith.constant 0 : i32
    %c0_i32_0 = arith.constant 0 : i32
    return %c0_i32, %arg0 : i32, i32
  }
}

</mosaic_0001>

<bundles_post_ra>
// kernel: tpu_custom_call.1
= control target key start
LH: loop header
LB: loop body
LE: loop exit
PB: predicated region body
PF: predicated region fallthrough
CT: control target
= control target key end

     0   :  { %9 = vsyncpa [#allocation3], 0  ;;  %s883_s0 = inlined_call_operand.hbm [shape: f32[8,256], index: 0, kind: input, shape index: {}]   ;;  %s884_s1 = inlined_call_operand.hbm [shape: f32[8,256], index: 1, kind: output, shape index: {0}]   ;;  %s885_s2 = inlined_call_operand.hbm [shape: f32[1,256], index: 2, kind: output, shape index: {1}]   ;;  %s886_s3 = inlined_call_operand.hbm [shape: f32[1,256], index: 3, kind: output, shape index: {2}]  }
   0x1   :  { %11 = vsyncpa [#allocation3 + $0x1], 0 }
   0x2   :  { %12 = vsyncpa [#allocation4], 0 }
   0x3   :  { %14 = vsyncpa [#allocation4 + $0x1], 0 }
   0x4   :  { %15 = vsyncpa [#allocation7], 0 }
   0x5   :  { %17 = vsyncpa [#allocation7 + $0x1], 0  ;;  %s655_s12 = smov 0   ;;  %s657_s13 = smov 0  }
   0x6   :  { %s659_s14 = smov 0   ;;  %s661_s15 = smov 0  }
   0x7 LB: > { %s676_s16 = sadd.s32 4294967295, %s629_s15   ;;  %s407_s17 = sadd.s32 4294967294, %s629_s15   ;;  %s629_s15 = sphi %s661_s15, %s903_s15   ;;  %s625_s14 = sphi %s659_s14, %s902_s14   ;;  %s621_s13 = sphi %s657_s13, %s901_s13   ;;  %s617_s12 = sphi %s655_s12, %s900_s12  }
   0x8   : > { %s680_s18 = sadd.s32 1, %s629_s15   ;;  %s30_s19 = sadd.s32 1, %s625_s14 }
   0x9   : > { %s27_s20 = ssub.s32 %s629_s15, %s680_s18  ;;  %p37_p0 = scmp.ne.s32.totalorder %s625_s14, %s621_s13 }
   0xa   : > { %p28_p1 = scmp.eq.s32.totalorder %s27_s20, 0  ;;  %p38_p2 = scmp.eq.s32.totalorder %s629_s15, 0 }
   0xb   : > { %p43_p3 = scmp.ne.s32.totalorder %s621_s13, %s617_s12  ;;  %p44_p4 = scmp.eq.s32.totalorder %s676_s16, 0 }
   0xc   : > { %s692_s21 = scalar_select %p28_p1, %s625_s14, %s30_s19  }
   0xd   : > { %p694_p5 = por %p38_p2, %p37_p0  ;;  %p698_p6 = por %p44_p4, %p43_p3 }
   0xe   : > { %p67_p7 = scmp.eq.s32.totalorder %s676_s16, 1  ;;  %p73_p8 = scmp.eq.s32.totalorder %s407_s17, 1 }
   0xf   : > { %s890_s23 = scalar_select %p698_p6, 1, 0 }
  0x10   : > { %p443_p10 = scmp.lt.s32.totalorder %s629_s15, 2  ;;  %p707_p11 = por %p67_p7, %p37_p0 }
  0x11   : > { %p711_p12 = por %p73_p8, %p43_p3  ;;  %s145_s26 = sand.u32 1, %s625_s14  }
  0x12   : > { %s891_s24 = scalar_select %p707_p11, 1, 0 }
  0x13   : > { %s892_s25 = scalar_select %p711_p12, 1, 0 }
  0x14   : > { %s411_s27 = sshll.u32 %s629_s15, 7  ;;  %s410_s28 = sshll.u32 %s145_s26, 3 }
  0x15   : > { %s720_s4 = scalar_lea.hbm %s883_s0, %s411_s27  ;;  %s149_s5 = scalar_lea.vmem [#allocation2], %s410_s28 }
  0x16   : > { %s156_s6 = sshll.u32 %s149_s5, 4  ;;  %p724_p13 = pnand %p443_p10, %p694_p5  ;;  %s728_s6 = int_to_ptr.vmem [resolvable:$true] %s156_s6 }
  0x17   : > { %s146_s8 = scalar_lea.sflag [#allocation3], %s145_s26  ;;  %s481_s9 = scalar_lea.hbm %s720_s4, 128 }
  0x18   : > { %p482_p2 = scmp.ne.s32.totalorder %s720_s4, %s481_s9  ;;  %p483_p3 = pneg %p724_p13 }
  0x19   : > { %s486_s19 = scalar_lea.hbm %s883_s0, 256  ;;  %p487_p5 = scmp.lt.s32.totalorder %s720_s4, %s883_s0 }
  0x1a   : > { %p484_p4 = pnand %p483_p3, %p482_p2  ;;  %p488_p8 = scmp.lt.s32.totalorder %s486_s19, %s481_s9 }
  0x1c   : > { %p485_p7 = pneg %p484_p4  ;;  %p489_p10 = por %p488_p8, %p487_p5 }
  0x1e   : > { %p490_p9 = pnand %p489_p10, %p485_p7 }
  0x20   : > { %493 = shalt.err (!%p490_p9)
}
  0x21   : > { %s494_s26 = scalar_lea.vmem %s728_s6, 128  ;;  %s631_s27 = smov [#allocation2]  }
  0x22   : > { %p495_p0 = scmp.ne.s32.totalorder %s728_s6, %s494_s26  ;;  %s499_s28 = sshll.u32 %s631_s27, 4  ;;  %s500_s28 = int_to_ptr.vmem [resolvable:$false] %s499_s28 }
  0x23   : > { %s501_s29 = scalar_lea.vmem %s500_s28, 256  ;;  %p502_p4 = scmp.lt.s32.totalorder %s728_s6, %s500_s28 }
  0x24   : > { %p497_p1 = pnand %p495_p0, %p483_p3  ;;  %p503_p12 = scmp.lt.s32.totalorder %s501_s29, %s494_s26 }
  0x26   : > { %p498_p2 = pneg %p497_p1  ;;  %p504_p11 = por %p503_p12, %p502_p4 }
  0x28   : > { %p505_p6 = pnand %p504_p11, %p498_p2 }
  0x2a   : > { %508 = shalt.err (!%p505_p6)
}
  0x2b   : > { %432 = dma.hbm_to_vmem [thread:$0]  (!%p724_p13), %s720_s4, 128, %s728_s6, %s146_s8  }
  0x2c   : > { %p894_p9 = scmp.lt.s32.totalorder %s629_s15, 3  ;;  %p895_p7 = scmp.ge.s32.totalorder %s629_s15, 1 }
  0x2e   : > { %p162_p0 = pnand %p895_p7, %p894_p9 }
  0x2f   : > { %s755_s30 = sand.u32 (!%p162_p0), 1, %s621_s13   ;;  %p896_p6 = scmp.ne.s32.totalorder (!%p162_p0), %s890_s23, 0 }
  0x30   : > { %165 = sbr.rel (%p162_p0) target bundleno = 141 (0x8d), region = 24  ;;  %s413_s5 = sshll.u32 (!%p162_p0), %s755_s30, 3 }
  0x31   : > { %s168_s9 = scalar_lea.sflag (!%p162_p0), [#allocation3], %s755_s30  ;;  %s171_s7 = scalar_lea.vmem (!%p162_p0), [#allocation2], %s413_s5 }
  0x35   : > { %604 = dma.done.wait (%p896_p6), %s168_s9, 128  }
  0x36   : > { %606 = vsyncadd (%p896_p6), %s168_s9, 4294967168  ;;  %v765_v0 = vld [vmem:[%s171_s7] sm:$0xff]  ;;  %s195_s23 = scalar_lea.vmem [#allocation6], %s755_s30  ;;  %s241_s6 = sand.u32 1, %s676_s16  }
  0x37   : > { %v203_v1 = vrot.slane %v765_v0, 4  ;;  %v209_v2 = vmul.f32 %v765_v0, %v765_v0  ;;  %s271_s4 = sshll.u32 %s195_s23, 4  ;;  %s417_s8 = sshll.u32 %s676_s16, 4  ;;  %s774_s4 = int_to_ptr.vmem [resolvable:$true] %s271_s4 }
  0x38   : > { %s783_s19 = scalar_lea.hbm %s885_s2, %s417_s8  ;;  %s788_s20 = scalar_lea.sflag [#allocation7], %s241_s6 }
  0x39   : > { %v204_v3 = vadd.f32 %v203_v1, %v765_v0  ;;  %v210_v4 = vrot.slane %v209_v2, 4  ;;  %s509_s22 = scalar_lea.vmem %s774_s4, 16  ;;  %p897_p12 = scmp.ne.s32.totalorder %s891_s24, 0 }
  0x3a   : > { %p510_p11 = scmp.ne.s32.totalorder %s774_s4, %s509_s22  ;;  %s632_s26 = smov [#allocation6]  }
  0x3b   : > { %v205_v5 = vrot.slane %v204_v3, 2  ;;  %v211_v6 = vadd.f32 %v210_v4, %v209_v2  ;;  %s513_s27 = sshll.u32 %s632_s26, 4  ;;  %s514_s27 = int_to_ptr.vmem [resolvable:$false] %s513_s27 }
  0x3c   : > { %p511_p13 = pnand %p510_p11, %p897_p12  ;;  %s515_s28 = scalar_lea.vmem %s514_s27, 32 }
  0x3d   : > { %v206_v7 = vadd.f32 %v205_v5, %v204_v3  ;;  %v212_v8 = vrot.slane %v211_v6, 2  ;;  %p516_p3 = scmp.lt.s32.totalorder %s774_s4, %s514_s27  ;;  %p517_p5 = scmp.lt.s32.totalorder %s515_s28, %s509_s22 }
  0x3e   : > { %p512_p1 = pneg %p511_p13 }
  0x3f   : > { %v207_v9 = vrot.slane %v206_v7, 1  ;;  %v213_v10 = vadd.f32 %v212_v8, %v211_v6  ;;  %p518_p8 = por %p517_p5, %p516_p3 }
  0x41   : > { %v208_v11 = vadd.f32 %v207_v9, %v206_v7  ;;  %v214_v12 = vrot.slane %v213_v10, 1  ;;  %p519_p10 = pnand %p518_p8, %p512_p1 }
  0x43   : > { %v215_v13 = vadd.f32 %v214_v12, %v213_v10  ;;  %v776_v14 = vmul.f32 0.125, %v208_v11 }
  0x45   : > { %v217_v15 = vmul.f32 0.125, %v215_v13  ;;  %v218_v16 = vmul.f32 %v776_v14, %v776_v14  ;;  %234 = vst [vmem:[%s195_s23] sm:$0x1] %v776_v14 }
  0x46   : > { %522 = shalt.err (!%p519_p10)
}
  0x47   : > { %s523_s29 = scalar_lea.hbm %s783_s19, 16  ;;  %s527_s23 = scalar_lea.hbm %s885_s2, 32 }
  0x48   : > { %p524_p2 = scmp.ne.s32.totalorder %s783_s19, %s523_s29  ;;  %p528_p7 = scmp.lt.s32.totalorder %s783_s19, %s885_s2 }
  0x49   : > { %p529_p0 = scmp.lt.s32.totalorder %s527_s23, %s523_s29 }
  0x4a   : > { %p525_p4 = pnand %p524_p2, %p897_p12 }
  0x4b   : > { %p530_p6 = por %p529_p0, %p528_p7 }
  0x4c   : > { %p526_p9 = pneg %p525_p4 }
  0x4e   : > { %p531_p11 = pnand %p530_p6, %p526_p9 }
  0x50   : > { %534 = shalt.err (!%p531_p11)
}
  0x51   : > { %424 = dma.vmem_to_hbm [thread:$0]  (%p897_p12), %s774_s4, 16, %s783_s19, %s788_s20   ;;  %v219_v17 = vsub.f32 %v217_v15, %v218_v16 }
  0x52   : > { %s201_s11 = scalar_lea.vmem [#allocation8], %s755_s30  ;;  %s282_s4 = scalar_lea.hbm %s886_s3, %s417_s8 }
  0x53   : > { %v220_v18 = vmax.f32 %v219_v17, 0.0  ;;  %s284_s22 = sshll.u32 %s201_s11, 4  ;;  %s633_s28 = smov [#allocation8]   ;;  %s812_s22 = int_to_ptr.vmem [resolvable:$true] %s284_s22 }
  0x54   : > { %s535_s19 = scalar_lea.vmem %s812_s22, 16  ;;  %s539_s29 = sshll.u32 %s633_s28, 4  ;;  %s540_s29 = int_to_ptr.vmem [resolvable:$false] %s539_s29 }
  0x55   : > { %477 = vrsqrt.f32 %v220_v18  ;;  %vm223_vm0 = vcmp.eq.f32.partialorder %v220_v18, inf  ;;  %v226_v20 = vand.u32 2147483648, %v220_v18  ;;  %vm225_vm1 = vcmp.eq.f32.partialorder %v220_v18, 0.0  ;;  %p536_p13 = scmp.ne.s32.totalorder %s812_s22, %s535_s19  ;;  %s541_s9 = scalar_lea.vmem %s540_s29, 32 }
  0x56   : > { %vm228_vm2 = vcmp.le.f32.partialorder %v220_v18, 1e-12  ;;  %p542_p5 = scmp.lt.s32.totalorder %s812_s22, %s540_s29  ;;  %p543_p8 = scmp.lt.s32.totalorder %s541_s9, %s535_s19 }
  0x57   : > { %p537_p1 = pnand %p536_p13, %p897_p12 }
  0x58   : > { %p544_p10 = por %p543_p8, %p542_p5 }
  0x59   : > { %p538_p3 = pneg %p537_p1 }
  0x5b   : > { %p545_p2 = pnand %p544_p10, %p538_p3 }
  0x62   : > { %v478_v19 = vpop.eup %477 }
  0x63   : > { %v222_v21 = vmul.f32 %v478_v19, %v220_v18 }
  0x65   : > { %v224_v22 = vsel %vm223_vm0, %v220_v18, %v222_v21 }
  0x66   : > { %v227_v23 = vsel %vm225_vm1, %v226_v20, %v224_v22 }
  0x67   : > { %v229_v24 = vsel %vm228_vm2, 1.0, %v227_v23 }
  0x68   : > { %479 = vrcp.f32 %v229_v24  ;;  %235 = vst [vmem:[%s201_s11] sm:$0x1] %v229_v24 }
  0x69   : > { %548 = shalt.err (!%p545_p2)
}
  0x6a   : > { %s549_s7 = scalar_lea.hbm %s282_s4, 16  ;;  %s553_s6 = scalar_lea.hbm %s886_s3, 32 }
  0x6b   : > { %p550_p4 = scmp.ne.s32.totalorder %s282_s4, %s549_s7  ;;  %p554_p0 = scmp.lt.s32.totalorder %s282_s4, %s886_s3 }
  0x6c   : > { %p555_p6 = scmp.lt.s32.totalorder %s553_s6, %s549_s7 }
  0x6d   : > { %p551_p9 = pnand %p550_p4, %p897_p12 }
  0x6e   : > { %p556_p11 = por %p555_p6, %p554_p0 }
  0x6f   : > { %p552_p7 = pneg %p551_p9 }
  0x71   : > { %p557_p13 = pnand %p556_p11, %p552_p7 }
  0x73   : > { %560 = shalt.err (!%p557_p13)
}
  0x74   : > { %425 = dma.vmem_to_hbm [thread:$0]  (%p897_p12), %s812_s22, 16, %s282_s4, %s788_s20   ;;  %v231_v25 = vsub.f32 %v765_v0, %v776_v14 }
  0x75   : > { %s189_s26 = scalar_lea.vmem [#allocation5], %s413_s5  ;;  %s416_s19 = sshll.u32 %s676_s16, 7  ;;  %v480_v26 = vpop.eup %479 }
  0x76   : > { %s258_s27 = sshll.u32 %s189_s26, 4  ;;  %v232_v27 = vmul.f32 %v480_v26, %v231_v25  ;;  %s256_s9 = scalar_lea.hbm %s884_s1, %s416_s19  ;;  %s841_s27 = int_to_ptr.vmem [resolvable:$true] %s258_s27 }
  0x77   : > { %s237_s20 = scalar_lea.sflag [#allocation4], %s755_s30  ;;  %s561_s22 = scalar_lea.vmem %s841_s27, 128 }
  0x78   : > { %233 = vst [vmem:[%s189_s26] sm:$0xff] %v232_v27  ;;  %p562_p1 = scmp.ne.s32.totalorder %s841_s27, %s561_s22  ;;  %s634_s5 = smov [#allocation5]  }
  0x79   : > { %s565_s16 = sshll.u32 %s634_s5, 4  ;;  %s566_s16 = int_to_ptr.vmem [resolvable:$false] %s565_s16 }
  0x7a   : > { %p563_p3 = pnand %p562_p1, %p897_p12  ;;  %s567_s4 = scalar_lea.vmem %s566_s16, 256 }
  0x7b   : > { %p568_p8 = scmp.lt.s32.totalorder %s841_s27, %s566_s16  ;;  %p569_p10 = scmp.lt.s32.totalorder %s567_s4, %s561_s22 }
  0x7c   : > { %p564_p5 = pneg %p563_p3 }
  0x7d   : > { %p570_p2 = por %p569_p10, %p568_p8 }
  0x7f   : > { %p571_p4 = pnand %p570_p2, %p564_p5 }
  0x81   : > { %574 = shalt.err (!%p571_p4)
}
  0x82   : > { %s575_s7 = scalar_lea.hbm %s256_s9, 128  ;;  %s579_s23 = scalar_lea.hbm %s884_s1, 256 }
  0x83   : > { %p576_p9 = scmp.ne.s32.totalorder %s256_s9, %s575_s7  ;;  %p580_p6 = scmp.lt.s32.totalorder %s256_s9, %s884_s1 }
  0x84   : > { %p581_p11 = scmp.lt.s32.totalorder %s579_s23, %s575_s7 }
  0x85   : > { %p577_p7 = pnand %p576_p9, %p897_p12 }
  0x86   : > { %p582_p13 = por %p581_p11, %p580_p6 }
  0x87   : > { %p578_p0 = pneg %p577_p7 }
  0x89   : > { %p583_p1 = pnand %p582_p13, %p578_p0 }
  0x8b   : > { %586 = shalt.err (!%p583_p1)
}
  0x8c   : > { %423 = dma.vmem_to_hbm [thread:$0]  (%p897_p12), %s841_s27, 128, %s256_s9, %s237_s20  }
  0x8d PF: > { %s296_s11 = sand.u32 1, %s617_s12   ;;  %p898_p3 = scmp.ne.s32.totalorder %s892_s25, 0 }
  0x8e   : > { %p899_p5 = scmp.ge.s32.totalorder %s629_s15, 2  ;;  %s297_s26 = scalar_lea.sflag [#allocation4], %s296_s11 }
  0x90   : > { %p434_p8 = pnand %p899_p5, %p898_p3 }
  0x92   : > { %p435_p10 = pneg %p434_p8 }
  0x94   : > { %608 = dma.done.wait (%p435_p10), %s297_s26, 128  }
  0x95   : > { %610 = vsyncadd (%p435_p10), %s297_s26, 4294967168  ;;  %s305_s19 = sand.u32 1, %s407_s17  }
  0x96   : > { %s306_s28 = scalar_lea.sflag [#allocation7], %s305_s19 }
  0x97   : > { %612 = dma.done.wait (%p435_p10), %s306_s28, 32  }
  0x98   : > { %614 = vsyncadd (%p435_p10), %s306_s28, 4294967264  ;;  %p20_p12 = scmp.ge.s32.totalorder %s680_s18, 4   ;;  %s900_s12 = smov %s621_s13 }
  0x99   : > { %s901_s13 = smov %s625_s14  ;;  %s902_s14 = smov %s692_s21 }
  0x9a   : > { %s903_s15 = smov %s680_s18  ;;  %22 = sbr.rel (!%p20_p12) target bundleno = 7 (0x7), region = 101 }
  0x9f   :  { %318 = vsyncpa [#allocation3], 1 }
  0xa0   :  { %320 = vsyncpa [#allocation3 + $0x1], 1 }
  0xa1   :  { %321 = vsyncpa [#allocation4], 1 }
  0xa2   :  { %323 = vsyncpa [#allocation4 + $0x1], 1 }
  0xa3   :  { %324 = vsyncpa [#allocation7], 1 }
  0xa4   :  { %326 = vsyncpa [#allocation7 + $0x1], 1 }

</bundles_post_ra>
